<compile_context>
chip_gen: v7x
topology: tpu7x:2x2x1
jax: 0.10.0
libtpu: 0.0.40
codegen_flags: <defaults>
</compile_context>

<pallas_src>
import functools

import jax
import jax.numpy as jnp
from jax import lax
from jax.experimental import pallas as pl
from jax.experimental.pallas import tpu as pltpu


def _nll_loss_kernel(pred_ref, target_ref, out_ref, *, n_total, tiles_per_core):
    # pred_ref  : (TILE, C) native dtype (f32/bf16), VMEM
    # target_ref: (TILE, 1) int8 (or int32 for C > 127), VMEM
    # out_ref   : (1, 8, C) f32, VMEM — per-core accumulator; its block index is
    #             constant across the trailing "arbitrary" axis, so it stays
    #             resident and is written back to HBM once per core.
    i = pl.program_id(1)

    @pl.when(i == 0)
    def _init():
        out_ref[...] = jnp.zeros_like(out_ref)

    pred = pred_ref[...]                        # keep native dtype for the select
    tgt = target_ref[...].astype(jnp.int32)     # (TILE, 1)
    tn, c = pred.shape

    col = lax.broadcasted_iota(jnp.int32, (tn, c), 1)
    sel_class = col == tgt                      # (TILE, C) bool

    blk = pl.program_id(0) * tiles_per_core + i     # global (unclamped) tile index
    is_full = (blk + 1) * tn <= n_total             # tile fully inside [0, n_total)

    def _accumulate(sel):
        # jnp.where (not multiply-by-mask): -inf log-probs at non-selected classes
        # must not turn into NaN.  Select in native dtype, accumulate in f32.
        masked = jnp.where(sel, pred, jnp.zeros_like(pred)).astype(jnp.float32)
        # Sublane-group partial sum: splitting the major dim is layout-free, the
        # axis-0 sum is pure elementwise vreg adds (no per-step cross-lane reduce).
        part = jnp.sum(masked.reshape(tn // 8, 8, c), axis=0)      # (8, C) f32
        out_ref[0] += part

    @pl.when(is_full)
    def _fast():            # interior tiles: no row-validity masking at all
        _accumulate(sel_class)

    @pl.when(jnp.logical_not(is_full))
    def _edge():            # ragged last tile / clamped duplicate tiles
        row = lax.broadcasted_iota(jnp.int32, (tn, c), 0) + blk * tn
        _accumulate(jnp.logical_and(sel_class, row < n_total))


def _default_num_cores():
    """2 TensorCores on v4 / v5p / v7x ('megacore'), 1 on v5e / v6e."""
    try:
        kind = jax.devices()[0].device_kind.lower()
    except Exception:
        return 1
    if any(tag in kind for tag in ("v7", "7x", "v5p", "v4")):
        return 2
    return 1


def nll_loss(pred, target, *, tile_n=8192, num_cores=None):
    """F.nll_loss(pred, target) with reduction='mean' as a tiled Pallas TPU kernel.

    pred: (N, C) log-probabilities (f32 or bf16); target: (N,) integer class ids.
    # TODO(synk): PyTorch's ignore_index=-100 / class weights are not implemented
    # (this module's forward calls F.nll_loss with defaults on valid class ids).
    """
    n, c = pred.shape
    # Lane-padded (N, 1) stream: int8 moves 4x fewer HBM bytes than int32.
    tgt_dtype = jnp.int8 if c <= 127 else jnp.int32
    target2d = target.astype(tgt_dtype).reshape(n, 1)

    if num_cores is None:
        num_cores = _default_num_cores()

    if n <= tile_n:
        # Single tile: pad rows to a sublane multiple so the in-kernel
        # (tn//8, 8, C) partial-sum reshape is valid.  Padded rows select class 0
        # of an all-zero pred row, i.e. contribute exactly 0 (and are also caught
        # by the edge-path row mask).
        pad = (-n) % 8
        if pad:
            pred = jnp.pad(pred, ((0, pad), (0, 0)))
            target2d = jnp.pad(target2d, ((0, pad), (0, 0)))
        tile = n + pad
    else:
        # 32 = sublane granule of the int8 target; also a multiple of 8/16 for
        # the f32/bf16 pred tile.
        tile = max(32, (tile_n // 32) * 32)

    num_tiles = pl.cdiv(n, tile)
    cores = num_cores if num_tiles >= num_cores else 1
    tiles_per_core = pl.cdiv(num_tiles, cores)

    def block_map(p, i):
        # Clamp trailing duplicate steps of the last core into range; their
        # contribution is neutralized in-kernel by the global row-index compare.
        blk = p * tiles_per_core + i
        return (jnp.minimum(blk, num_tiles - 1), 0)

    kernel = functools.partial(_nll_loss_kernel, n_total=n,
                               tiles_per_core=tiles_per_core)

    # Advisory cost: reflect the *padded* HBM traffic (both operands are padded to
    # 128 lanes in their TPU HBM layout).
    p_bytes = jnp.dtype(pred.dtype).itemsize
    t_bytes = jnp.dtype(tgt_dtype).itemsize
    cost = pl.CostEstimate(
        flops=4 * n * c, transcendentals=0,
        bytes_accessed=n * 128 * (p_bytes + t_bytes) + cores * 8 * c * 4)

    partials = pl.pallas_call(
        kernel,
        out_shape=jax.ShapeDtypeStruct((cores, 8, c), jnp.float32),
        grid=(cores, tiles_per_core),
        in_specs=[
            pl.BlockSpec((tile, c), block_map),
            pl.BlockSpec((tile, 1), block_map),
        ],
        out_specs=pl.BlockSpec((1, 8, c), lambda p, i: (p, 0, 0)),
        compiler_params=pltpu.CompilerParams(
            dimension_semantics=("parallel", "arbitrary")),
        cost_estimate=cost,
    )(pred, target2d)

    # One final cross-lane reduce on a tiny array; divide by the GLOBAL row count.
    return -jnp.sum(partials) / jnp.float32(n)


if __name__ == "__main__":
    key = jax.random.PRNGKey(0)
    k1, k2, k3, k4 = jax.random.split(key, 4)

    # --- small sem-seg-like case: batch=2 * 16 points, 13 classes --------------
    N, C = 32, 13
    pred = jax.nn.log_softmax(jax.random.normal(k1, (N, C), jnp.float32), axis=-1)
    target = jax.random.randint(k2, (N,), 0, C, dtype=jnp.int32)
    loss = jax.block_until_ready(nll_loss(pred, target))
    ref = -jnp.mean(pred[jnp.arange(N), target])
    assert jnp.allclose(loss, ref, atol=1e-5, rtol=1e-5), (loss, ref)

    # --- multi-tile / ragged path (last tile partial, edge masking) ------------
    N2 = 200
    pred2 = jax.nn.log_softmax(jax.random.normal(k3, (N2, C), jnp.float32), axis=-1)
    target2 = jax.random.randint(k4, (N2,), 0, C, dtype=jnp.int32)
    loss2 = jax.block_until_ready(nll_loss(pred2, target2, tile_n=64))
    ref2 = -jnp.mean(pred2[jnp.arange(N2), target2])
    assert jnp.allclose(loss2, ref2, atol=1e-5, rtol=1e-5), (loss2, ref2)

    # --- small N not a multiple of 8 (wrapper padding path) --------------------
    N3 = 50
    pred3 = jax.nn.log_softmax(jax.random.normal(k3, (N3, C), jnp.float32), axis=-1)
    target3 = jax.random.randint(k4, (N3,), 0, C, dtype=jnp.int32)
    loss3 = jax.block_until_ready(nll_loss(pred3, target3))
    ref3 = -jnp.mean(pred3[jnp.arange(N3), target3])
    assert jnp.allclose(loss3, ref3, atol=1e-5, rtol=1e-5), (loss3, ref3)

    # --- native bf16 input (select in bf16, f32 accumulation) ------------------
    pred_bf16 = pred.astype(jnp.bfloat16)
    loss_bf = jax.block_until_ready(nll_loss(pred_bf16, target))
    ref_bf = -jnp.mean(pred_bf16.astype(jnp.float32)[jnp.arange(N), target])
    assert jnp.allclose(loss_bf, ref_bf, atol=1e-3, rtol=1e-3), (loss_bf, ref_bf)

    print("KERNEL_OK")
</pallas_src>

<mosaic_0001>
module attributes {stable_mosaic.version = 11 : i64} {
  func.func @_nll_loss_kernel(%arg0: i32, %arg1: i32, %arg2: memref<32x13xf32, #tpu.memory_space<vmem>>, %arg3: memref<32x1xi8, #tpu.memory_space<vmem>>, %arg4: memref<1x8x13xf32, #tpu.memory_space<vmem>>) attributes {dimension_semantics = [#tpu.dimension_semantics<parallel>, #tpu.dimension_semantics<arbitrary>], iteration_bounds = array<i64: 1, 1>, scalar_prefetch = 0 : i64, scratch_operands = 0 : i64, tpu.core_type = #tpu.core_type<tc>, window_params = [{transform_indices = @transform_0, window_bounds = array<i64: 32, 13>}, {transform_indices = @transform_1, window_bounds = array<i64: 32, 1>}, {transform_indices = @transform_2, window_bounds = array<i64: 1, 8, 13>}]} {
    %c0_i32 = arith.constant 0 : i32
    %0 = arith.cmpi eq, %arg1, %c0_i32 : i32
    %1 = arith.extui %0 : i1 to i32
    %c0_i32_0 = arith.constant 0 : i32
    %2 = arith.cmpi ne, %1, %c0_i32_0 : i32
    scf.if %2 {
      %cst = arith.constant 0.000000e+00 : f32
      %19 = vector.broadcast %cst : f32 to vector<1x8x13xf32>
      %c0_8 = arith.constant 0 : index
      %c0_9 = arith.constant 0 : index
      %c0_10 = arith.constant 0 : index
      %20 = vector.load %arg4[%c0_8, %c0_9, %c0_10] : memref<1x8x13xf32, #tpu.memory_space<vmem>>, vector<1x8x13xf32>
      tpu.vector_store %arg4[%c0_8, %c0_9, %c0_10], %19 {strides = array<i32>} : memref<1x8x13xf32, #tpu.memory_space<vmem>>, vector<1x8x13xf32>,
    } else {
    }
    %c0 = arith.constant 0 : index
    %c0_1 = arith.constant 0 : index
    %3 = vector.load %arg2[%c0, %c0_1] : memref<32x13xf32, #tpu.memory_space<vmem>>, vector<32x13xf32>
    %c0_2 = arith.constant 0 : index
    %c0_3 = arith.constant 0 : index
    %4 = vector.load %arg3[%c0_2, %c0_3] : memref<32x1xi8, #tpu.memory_space<vmem>>, vector<32x1xi8>
    %5 = arith.extsi %4 : vector<32x1xi8> to vector<32x1xi32>
    %6 = tpu.iota {dimensions = array<i32: 1>} : vector<32x13xi32>
    %7 = vector.broadcast %5 : vector<32x1xi32> to vector<32x13xi32>
    %8 = arith.cmpi eq, %6, %7 : vector<32x13xi32>
    %c1_i32 = arith.constant 1 : i32
    %9 = arith.muli %arg0, %c1_i32 : i32
    %10 = arith.addi %9, %arg1 : i32
    %c1_i32_4 = arith.constant 1 : i32
    %11 = arith.addi %10, %c1_i32_4 : i32
    %c32_i32 = arith.constant 32 : i32
    %12 = arith.muli %11, %c32_i32 : i32
    %c32_i32_5 = arith.constant 32 : i32
    %13 = arith.cmpi sle, %12, %c32_i32_5 : i32
    %14 = arith.extui %13 : i1 to i32
    %c0_i32_6 = arith.constant 0 : i32
    %15 = arith.cmpi ne, %14, %c0_i32_6 : i32
    scf.if %15 {
      %cst = arith.constant 0.000000e+00 : f32
      %19 = vector.broadcast %cst : f32 to vector<32x13xf32>
      %20 = arith.select %8, %3, %19 : vector<32x13xi1>, vector<32x13xf32>
      %21 = vector.shape_cast %20 : vector<32x13xf32> to vector<4x8x13xf32>
      %cst_8 = arith.constant dense<0.000000e+00> : vector<8x13xf32>
      %22 = vector.multi_reduction <add>, %21, %cst_8 [0] : vector<4x8x13xf32> to vector<8x13xf32>
      %c0_9 = arith.constant 0 : index
      %c0_10 = arith.constant 0 : index
      %c0_11 = arith.constant 0 : index
      %23 = vector.load %arg4[%c0_9, %c0_10, %c0_11] : memref<1x8x13xf32, #tpu.memory_space<vmem>>, vector<1x8x13xf32>
      %24 = vector.shape_cast %23 : vector<1x8x13xf32> to vector<8x13xf32>
      %25 = arith.addf %24, %22 : vector<8x13xf32>
      %c0_12 = arith.constant 0 : index
      %c0_13 = arith.constant 0 : index
      %c0_14 = arith.constant 0 : index
      %26 = vector.load %arg4[%c0_12, %c0_13, %c0_14] : memref<1x8x13xf32, #tpu.memory_space<vmem>>, vector<1x8x13xf32>
      %27 = vector.shape_cast %26 : vector<1x8x13xf32> to vector<8x13xf32>
      %28 = vector.shape_cast %25 : vector<8x13xf32> to vector<1x8x13xf32>
      tpu.vector_store %arg4[%c0_12, %c0_13, %c0_14], %28 {strides = array<i32>} : memref<1x8x13xf32, #tpu.memory_space<vmem>>, vector<1x8x13xf32>,
    } else {
    }
    %true = arith.constant true
    %16 = arith.xori %13, %true : i1
    %17 = arith.extui %16 : i1 to i32
    %c0_i32_7 = arith.constant 0 : i32
    %18 = arith.cmpi ne, %17, %c0_i32_7 : i32
    scf.if %18 {
      %19 = tpu.iota {dimensions = array<i32: 0>} : vector<32x13xi32>
      %c32_i32_8 = arith.constant 32 : i32
      %20 = arith.muli %10, %c32_i32_8 : i32
      %21 = vector.broadcast %20 : i32 to vector<32x13xi32>
      %22 = arith.addi %19, %21 : vector<32x13xi32>
      %c32_i32_9 = arith.constant 32 : i32
      %23 = vector.broadcast %c32_i32_9 : i32 to vector<32x13xi32>
      %24 = arith.cmpi slt, %22, %23 : vector<32x13xi32>
      %25 = arith.andi %8, %24 : vector<32x13xi1>
      %cst = arith.constant 0.000000e+00 : f32
      %26 = vector.broadcast %cst : f32 to vector<32x13xf32>
      %27 = arith.select %25, %3, %26 : vector<32x13xi1>, vector<32x13xf32>
      %28 = vector.shape_cast %27 : vector<32x13xf32> to vector<4x8x13xf32>
      %cst_10 = arith.constant dense<0.000000e+00> : vector<8x13xf32>
      %29 = vector.multi_reduction <add>, %28, %cst_10 [0] : vector<4x8x13xf32> to vector<8x13xf32>
      %c0_11 = arith.constant 0 : index
      %c0_12 = arith.constant 0 : index
      %c0_13 = arith.constant 0 : index
      %30 = vector.load %arg4[%c0_11, %c0_12, %c0_13] : memref<1x8x13xf32, #tpu.memory_space<vmem>>, vector<1x8x13xf32>
      %31 = vector.shape_cast %30 : vector<1x8x13xf32> to vector<8x13xf32>
      %32 = arith.addf %31, %29 : vector<8x13xf32>
      %c0_14 = arith.constant 0 : index
      %c0_15 = arith.constant 0 : index
      %c0_16 = arith.constant 0 : index
      %33 = vector.load %arg4[%c0_14, %c0_15, %c0_16] : memref<1x8x13xf32, #tpu.memory_space<vmem>>, vector<1x8x13xf32>
      %34 = vector.shape_cast %33 : vector<1x8x13xf32> to vector<8x13xf32>
      %35 = vector.shape_cast %32 : vector<8x13xf32> to vector<1x8x13xf32>
      tpu.vector_store %arg4[%c0_14, %c0_15, %c0_16], %35 {strides = array<i32>} : memref<1x8x13xf32, #tpu.memory_space<vmem>>, vector<1x8x13xf32>,
    } else {
    }
    return
  }
  func.func @transform_0(%arg0: i32, %arg1: i32) -> (i32, i32) {
    %c1_i32 = arith.constant 1 : i32
    %0 = arith.muli %arg0, %c1_i32 : i32
    %1 = arith.addi %0, %arg1 : i32
    %c0_i32 = arith.constant 0 : i32
    %2 = arith.minsi %1, %c0_i32 : i32
    %c0_i32_0 = arith.constant 0 : i32
    %c0_i32_1 = arith.constant 0 : i32
    return %2, %c0_i32_0 : i32, i32
  }
  func.func @transform_1(%arg0: i32, %arg1: i32) -> (i32, i32) {
    %c1_i32 = arith.constant 1 : i32
    %0 = arith.muli %arg0, %c1_i32 : i32
    %1 = arith.addi %0, %arg1 : i32
    %c0_i32 = arith.constant 0 : i32
    %2 = arith.minsi %1, %c0_i32 : i32
    %c0_i32_0 = arith.constant 0 : i32
    %c0_i32_1 = arith.constant 0 : i32
    return %2, %c0_i32_0 : i32, i32
  }
  func.func @transform_2(%arg0: i32, %arg1: i32) -> (i32, i32, i32) {
    %c0_i32 = arith.constant 0 : i32
    %c0_i32_0 = arith.constant 0 : i32
    %c0_i32_1 = arith.constant 0 : i32
    return %arg0, %c0_i32, %c0_i32_0 : i32, i32, i32
  }
}

</mosaic_0001>

<bundles_post_ra>
// kernel: tpu_custom_call.1
= control target key start
LH: loop header
LB: loop body
LE: loop exit
PB: predicated region body
PF: predicated region fallthrough
CT: control target
= control target key end

     0   :  { %s287_s0 = inlined_call_operand.vmem [shape: f32[32,13], index: 0, kind: input, shape index: {}]   ;;  %s288_s1 = inlined_call_operand.vmem [shape: s8[32,1], index: 1, kind: input, shape index: {}]   ;;  %s289_s2 = inlined_call_operand.hbm [shape: f32[1,8,13], index: 2, kind: output, shape index: {}]  }
   0x1   :  { %v206_v0 = vld [vmem:[%s288_s1] sm:$0xff]  }
   0x2   :  { %7 = vsyncpa [#allocation3], 0  ;;  %v236_v1 = vmov 0   ;;  %v204_v2 = vunpack.c.2.s8 %v206_v0  ;;  %v200_v3 = vunpack.c.0.s8 %v206_v0  ;;  %v205_v4 = vunpack.c.3.s8 %v206_v0  ;;  %v82_v11 = vld [vmem:[%s287_s0] sm:$0xff]  ;;  %v84_v12 = vld [vmem:[%s287_s0 + $0x10] sm:$0xff]  ;;  %s238_s18 = smov [#allocation2]  }
   0x3   :  { %211 = vset.pattern.permute.xlu1 %v236_v1  ;;  %210 = vset.pattern.permute.xlu0 %v236_v1  ;;  %v201_v5 = vunpack.c.1.s8 %v206_v0  ;;  %vm80_vm0 = vcmask 105472   ;;  %v237_v6 = vmov 0.0   ;;  %v94_v7 = vlaneseq  ;;  %v83_v13 = vld [vmem:[%s287_s0 + $0x8] sm:$0xff]  ;;  %v85_v17 = vld [vmem:[%s287_s0 + $0x18] sm:$0xff]  ;;  %s178_s19 = sshll.u32 %s238_s18, 4  ;;  %s179_s19 = int_to_ptr.vmem [resolvable:$true] %s178_s19 }
   0x4   :  { %103 = vperm.xlu1 %211, %v204_v2   ;;  %97 = vperm.xlu0 %210, %v200_v3   ;;  %81 = vst.msk [vmem:[#allocation2] sm:$0xff] %vm80_vm0, %v237_v6  ;;  %s212_s0 = scalar_lea.vmem %s179_s19, 128  ;;  %p217_p1 = scmp.lt.s32.totalorder %s179_s19, %s179_s19 }
   0x5   :  { %v95_v8 = vand.u32 127, %v94_v7  ;;  %p213_p0 = scmp.ne.s32.totalorder %s179_s19, %s212_s0  ;;  %p218_p2 = scmp.lt.s32.totalorder %s212_s0, %s212_s0 }
   0x7   :  { %p219_p3 = por %p218_p2, %p217_p1 }
   0x8   :  { %106 = vperm.xlu1 %211, %v205_v4   ;;  %100 = vperm.xlu0 %210, %v201_v5  }
   0x9   :  { %p220_p4 = pnand %p219_p3, %p213_p0 }
   0xb   :  { %v131_v27 = vld [vmem:[#allocation2] sm:$0xff] }
  0x83   :  { %v104_v9 = vpop.permute.xlu1 %103  ;;  %v98_v10 = vpop.permute.xlu0 %97 }
  0x84   :  { %vm108_vm1 = vcmp.eq.s32.totalorder %v95_v8, %v98_v10  ;;  %vm110_vm2 = vcmp.eq.s32.totalorder %v95_v8, %v104_v9 }
  0x85   :  { %v119_v14 = vsel %vm108_vm1, %v82_v11, 0.0  ;;  %v121_v18 = vsel %vm110_vm2, %v84_v12, 0.0 }
  0x86   :  { %v124_v20 = vsel %vm80_vm0, %v119_v14, 0.0  ;;  %v127_v24 = vsel %vm80_vm0, %v121_v18, 0.0 }
  0x87   :  { %v107_v15 = vpop.permute.xlu1 %106  ;;  %v101_v16 = vpop.permute.xlu0 %100 }
  0x88   :  { %vm111_vm3 = vcmp.eq.s32.totalorder %v95_v8, %v107_v15  ;;  %vm109_vm4 = vcmp.eq.s32.totalorder %v95_v8, %v101_v16 }
  0x89   :  { %v120_v19 = vsel %vm109_vm4, %v83_v13, 0.0  ;;  %v122_v22 = vsel %vm111_vm3, %v85_v17, 0.0 }
  0x8a   :  { %v125_v21 = vsel %vm80_vm0, %v120_v19, 0.0  ;;  %v129_v26 = vsel %vm80_vm0, %v122_v22, 0.0 }
  0x8b   :  { %v126_v23 = vadd.f32 %v125_v21, %v124_v20 }
  0x8d   :  { %v128_v25 = vadd.f32 %v127_v24, %v126_v23 }
  0x8f   :  { %v130_v28 = vadd.f32 %v129_v26, %v128_v25 }
  0x91   :  { %v132_v29 = vadd.f32 %v131_v27, %v130_v28 }
  0x93   :  { %133 = vst.msk [vmem:[#allocation2] sm:$0xff] %vm80_vm0, %v132_v29 }
  0x94   :  { %223 = shalt.err (!%p220_p4)
}
  0x95   :  { %s224_s22 = scalar_lea.hbm %s289_s2, 128 }
  0x96   :  { %p225_p5 = scmp.ne.s32.totalorder %s289_s2, %s224_s22  ;;  %p228_p6 = scmp.lt.u32.totalorder %s224_s22, %s289_s2 }
  0x98   :  { %p230_p7 = pnand %p228_p6, %p225_p5 }
  0x9a   :  { %233 = shalt.err (!%p230_p7)
}
  0x9b   :  { %181 = dma.vmem_to_hbm [thread:$0]  %s179_s19, 128, %s289_s2, [#allocation3]  }
  0x9c   :  { %234 = dma.done.wait [#allocation3], 128  }
  0x9d   :  { %235 = vsyncadd [#allocation3], 4294967168 }
  0x9e   :  { %185 = vsyncpa [#allocation3], 1 }

</bundles_post_ra>
